<compile_context>
chip_gen: v6e
topology: v6e:2x2x1
jax: 0.10.0
libtpu: 0.0.40
codegen_flags: <defaults>
</compile_context>

<pallas_src>
import functools

import numpy as np
import jax
import jax.numpy as jnp
from jax.experimental import pallas as pl
from jax.experimental.pallas import tpu as pltpu

EPS = 1e-5                      # PyTorch BatchNorm default eps
VMEM_LIMIT = 48 * 1024 * 1024   # fits v7x's 64 MiB VMEM with headroom; fine on v5e/v6e


# ---------------------------------------------------------------------------
# Host-built constants (tiny, built once per layer)
# ---------------------------------------------------------------------------
def _upsample_pad_matrix(hin, win, s):
    """0/1 matrix M of shape (Hp*Wp, Hin*Win) such that M @ x_flat is the
    nearest-upsampled (factor s) image embedded in a zero ring of width 1
    (the Conv2d padding=1), flattened row-major."""
    hup, wup = hin * s, win * s
    hp, wp = hup + 2, wup + 2
    m = np.zeros((hp * wp, hin * win), np.float32)
    for i in range(hp):
        for j in range(wp):
            if 1 <= i <= hup and 1 <= j <= wup:
                m[i * wp + j, ((i - 1) // s) * win + ((j - 1) // s)] = 1.0
    return jnp.asarray(m)


# ---------------------------------------------------------------------------
# Pallas kernels
# ---------------------------------------------------------------------------
def _mlp_relu_bn_kernel(x_ref, w_ref, g_ref, b_ref, y_ref, *, batch):
    """LatentLinear: ReLU(x @ w) -> BatchNorm1d (training-mode batch stats),
    computed and applied in one shot (the whole batch is in this block)."""
    z = jnp.dot(x_ref[...], w_ref[...], preferred_element_type=jnp.float32)
    z = jnp.maximum(z, 0.0)
    inv_b = 1.0 / batch
    mean = jnp.sum(z, axis=0, keepdims=True) * inv_b
    var = jnp.maximum(jnp.sum(z * z, axis=0, keepdims=True) * inv_b - mean * mean, 0.0)
    scale = g_ref[...] * jax.lax.rsqrt(var + EPS)
    shift = b_ref[...] - mean * scale
    y_ref[...] = (z * scale + shift).astype(y_ref.dtype)


def _conv_core(x_ref, scale_ref, shift_ref, m_ref, w_ref, *, cin, cout, wp, lout):
    """[producer-BN affine] -> upsample+pad (one matmul) -> 3x3 conv
    (9 shifted-slice matmuls over the flattened padded image)."""
    xf = x_ref[0].astype(jnp.float32) * scale_ref[...] + shift_ref[...]   # (Min, Cin)
    p = jnp.dot(m_ref[...], xf.astype(jnp.bfloat16),
                preferred_element_type=jnp.float32)                       # (Hp*Wp, Cin)
    pb = p.astype(jnp.bfloat16)
    acc = jnp.zeros((lout, cout), jnp.float32)
    for dy in range(3):
        for dx in range(3):
            t = dy * 3 + dx
            start = dy * wp + dx
            acc = acc + jnp.dot(pb[start:start + lout, :],
                                w_ref[t * cin:(t + 1) * cin, :],
                                preferred_element_type=jnp.float32)
    return acc                                                            # (Lout, Cout)


def _extract_interior(acc, *, hup, wup, wp):
    """Drop the pad-ring rows of the flattened conv output (static slices)."""
    return jnp.concatenate([acc[r * wp:r * wp + wup, :] for r in range(hup)], axis=0)


def _conv_relu_stats_kernel(x_ref, scale_ref, shift_ref, m_ref, w_ref,
                            y_ref, st_ref, *, cin, cout, hup, wup, wp, lout):
    acc = _conv_core(x_ref, scale_ref, shift_ref, m_ref, w_ref,
                     cin=cin, cout=cout, wp=wp, lout=lout)
    z = _extract_interior(jnp.maximum(acc, 0.0), hup=hup, wup=wup, wp=wp)  # (Mout, Cout) f32
    y_ref[0] = z.astype(y_ref.dtype)                  # raw (pre-BN) ReLU activations, bf16
    ssum = jnp.sum(z, axis=0, keepdims=True)
    ssq = jnp.sum(z * z, axis=0, keepdims=True)
    st_ref[0] = jnp.concatenate([ssum, ssq], axis=0)  # per-image partial BN stats


def _conv_bias_sigmoid_kernel(x_ref, scale_ref, shift_ref, m_ref, w_ref, b_ref,
                              y_ref, *, cin, cout, hup, wup, wp, lout):
    acc = _conv_core(x_ref, scale_ref, shift_ref, m_ref, w_ref,
                     cin=cin, cout=cout, wp=wp, lout=lout)
    z = _extract_interior(acc, hup=hup, wup=wup, wp=wp)
    y_ref[0] = jax.nn.sigmoid(z + b_ref[...]).astype(y_ref.dtype)


# ---------------------------------------------------------------------------
# Kernel wrappers
# ---------------------------------------------------------------------------
def mlp_relu_bn(x, w, gamma, beta):
    B, K = x.shape
    N = w.shape[1]
    return pl.pallas_call(
        functools.partial(_mlp_relu_bn_kernel, batch=float(B)),
        grid=(1,),
        in_specs=[
            pl.BlockSpec((B, K), lambda i: (0, 0)),
            pl.BlockSpec((K, N), lambda i: (0, 0)),
            pl.BlockSpec((1, N), lambda i: (0, 0)),
            pl.BlockSpec((1, N), lambda i: (0, 0)),
        ],
        out_specs=pl.BlockSpec((B, N), lambda i: (0, 0)),
        out_shape=jax.ShapeDtypeStruct((B, N), jnp.bfloat16),
        compiler_params=pltpu.CompilerParams(
            dimension_semantics=("arbitrary",), vmem_limit_bytes=VMEM_LIMIT),
        cost_estimate=pl.CostEstimate(
            flops=int(2 * B * K * N + 8 * B * N),
            transcendentals=int(N),
            bytes_accessed=int(2 * B * K + 2 * K * N + 8 * N + 2 * B * N)),
    )(x.astype(jnp.bfloat16), w.astype(jnp.bfloat16),
      gamma.reshape(1, N).astype(jnp.float32),
      beta.reshape(1, N).astype(jnp.float32))


def fused_upsample_conv(x, scale, shift, w, *, hin, win, s, cin, cout,
                        relu_stats=True, bias=None):
    """Fused [producer BN affine] -> Upsample(nearest, s) -> zero-pad ->
    Conv2d 3x3 (no bias) -> {ReLU + partial BN stats | +bias + Sigmoid}.

    x:     (B, Hin*Win, Cin) bf16  raw (pre-BN) activations of the producer
    scale: (1, Cin) f32            producer's BatchNorm scale (folded in)
    shift: (1, Cin) f32            producer's BatchNorm shift (folded in)
    w:     (3, 3, Cin, Cout)       conv weights (HWIO)
    """
    B = x.shape[0]
    m_in = hin * win
    hup, wup = hin * s, win * s
    hp, wp = hup + 2, wup + 2
    m_out = hup * wup
    lout = hp * wp - 2 * (wp + 1)
    m = _upsample_pad_matrix(hin, win, s)

    in_specs = [
        pl.BlockSpec((1, m_in, cin), lambda b: (b, 0, 0)),   # activations (per image)
        pl.BlockSpec((1, cin), lambda b: (0, 0)),            # producer BN scale
        pl.BlockSpec((1, cin), lambda b: (0, 0)),            # producer BN shift
        pl.BlockSpec((hp * wp, m_in), lambda b: (0, 0)),     # upsample+pad matrix
        pl.BlockSpec((9 * cin, cout), lambda b: (0, 0)),     # conv weights
    ]
    inputs = [
        x.astype(jnp.bfloat16),
        scale.reshape(1, cin).astype(jnp.float32),
        shift.reshape(1, cin).astype(jnp.float32),
        m.astype(jnp.bfloat16),
        w.reshape(9 * cin, cout).astype(jnp.bfloat16),
    ]
    flops = int(B * (2 * hp * wp * m_in * cin + 18 * lout * cin * cout))

    if relu_stats:
        kernel = functools.partial(_conv_relu_stats_kernel, cin=cin, cout=cout,
                                   hup=hup, wup=wup, wp=wp, lout=lout)
        out_shape = [jax.ShapeDtypeStruct((B, m_out, cout), jnp.bfloat16),
                     jax.ShapeDtypeStruct((B, 2, cout), jnp.float32)]
        out_specs = [pl.BlockSpec((1, m_out, cout), lambda b: (b, 0, 0)),
                     pl.BlockSpec((1, 2, cout), lambda b: (b, 0, 0))]
        transcendentals = 0
        out_bytes = 2 * B * m_out * cout + 8 * B * cout
    else:
        assert bias is not None
        kernel = functools.partial(_conv_bias_sigmoid_kernel, cin=cin, cout=cout,
                                   hup=hup, wup=wup, wp=wp, lout=lout)
        in_specs.append(pl.BlockSpec((1, cout), lambda b: (0, 0)))
        inputs.append(bias.reshape(1, cout).astype(jnp.float32))
        out_shape = jax.ShapeDtypeStruct((B, m_out, cout), jnp.float32)
        out_specs = pl.BlockSpec((1, m_out, cout), lambda b: (b, 0, 0))
        transcendentals = B * m_out
        out_bytes = 4 * B * m_out * cout

    return pl.pallas_call(
        kernel,
        grid=(B,),
        in_specs=in_specs,
        out_specs=out_specs,
        out_shape=out_shape,
        compiler_params=pltpu.CompilerParams(
            dimension_semantics=("parallel",),         # per-image partial stats -> no carry
            vmem_limit_bytes=VMEM_LIMIT),
        cost_estimate=pl.CostEstimate(
            flops=flops,
            transcendentals=int(transcendentals),
            bytes_accessed=int(2 * B * m_in * cin + 2 * hp * wp * m_in
                               + 2 * 9 * cin * cout + 8 * cin + out_bytes)),
    )(*inputs)


def _bn_affine(stats, count, gamma, beta):
    """Reduce per-image partial (sum, sumsq) to the BatchNorm scale/shift that
    the consumer kernel folds into its input.  O(C) plain-JAX work."""
    tot = jnp.sum(stats, axis=0)                         # (2, C)
    mean = tot[0] / count
    var = jnp.maximum(tot[1] / count - mean * mean, 0.0)  # biased (training-mode) var
    scale = gamma * jax.lax.rsqrt(var + EPS)
    shift = beta - mean * scale
    return scale.reshape(1, -1), shift.reshape(1, -1)


# ---------------------------------------------------------------------------
# Decoder
# ---------------------------------------------------------------------------
def build_params(key, layers):
    """Deterministic synthetic parameters (shapes follow the PyTorch __init__)."""
    c_in = 4 * layers[1]
    c_out = layers[-1]
    params = {}
    k = key

    def nxt():
        nonlocal k
        k, sub = jax.random.split(k)
        return sub

    # LatentLinear: Linear(layers[0], c_in, bias=False) + BN1d(c_in)
    params["mlp_w"] = 0.1 * jax.random.normal(nxt(), (layers[0], c_in), jnp.float32)
    params["mlp_g"] = jnp.ones((c_in,), jnp.float32)
    params["mlp_b"] = jnp.zeros((c_in,), jnp.float32)

    # net: ConvUp(i, o) for (i, o) in zip(layers[1:-2], layers[2:-1])
    for idx, (ci, co) in enumerate(zip(layers[1:-2], layers[2:-1])):
        params[f"conv{idx}_w"] = 0.1 * jax.random.normal(nxt(), (3, 3, ci, co), jnp.float32)
        params[f"conv{idx}_g"] = jnp.ones((co,), jnp.float32)
        params[f"conv{idx}_b"] = jnp.zeros((co,), jnp.float32)

    # out: ConvUp(layers[-2], layers[-1], scale_factor) + Conv2d(c_out, 1, 3, 1, 1)
    params["out_w"] = 0.1 * jax.random.normal(nxt(), (3, 3, layers[-2], c_out), jnp.float32)
    params["out_g"] = jnp.ones((c_out,), jnp.float32)
    params["out_b"] = jnp.zeros((c_out,), jnp.float32)
    params["final_w"] = 0.1 * jax.random.normal(nxt(), (3, 3, c_out, 1), jnp.float32)
    params["final_b"] = 0.1 * jax.random.normal(nxt(), (1,), jnp.float32)
    return params


def decoder_forward(x, params, layers, out_size):
    """x: (B, layers[0]) -> (B, 1, out_size, out_size)  (returned in NCHW)."""
    B = x.shape[0]
    ch = layers[1]

    # LatentLinear: Linear(no bias) -> ReLU -> BatchNorm1d (applied in-kernel)
    h = mlp_relu_bn(x, params["mlp_w"], params["mlp_g"], params["mlp_b"])   # (B, 4*ch) bf16

    # .view(B, c_in//4, 2, 2) (NCHW) -> channels-last flattened (B, H*W, C) layout
    h = h.reshape(B, ch, 2, 2).transpose(0, 2, 3, 1).reshape(B, 4, ch)

    hin = win = 2
    cin = ch
    # First conv's input BN was already applied inside the MLP kernel -> identity affine.
    scale = jnp.ones((1, cin), jnp.float32)
    shift = jnp.zeros((1, cin), jnp.float32)

    # net: chain of ConvUp (Upsample x2 -> Conv 3x3 -> ReLU -> BN folded into consumer)
    for idx, (ci, co) in enumerate(zip(layers[1:-2], layers[2:-1])):
        h, stats = fused_upsample_conv(h, scale, shift, params[f"conv{idx}_w"],
                                       hin=hin, win=win, s=2, cin=cin, cout=co)
        hin, win = hin * 2, win * 2
        scale, shift = _bn_affine(stats, float(B * hin * win),
                                  params[f"conv{idx}_g"], params[f"conv{idx}_b"])
        cin = co

    # out: ConvUp(layers[-2], layers[-1], scale_factor = out_size / 2**(len(layers)-2))
    sf = out_size / (2 ** (len(layers) - 2))
    assert sf == int(sf), "example chosen so that nearest-upsample scale is an integer"
    sf = int(sf)
    co = layers[-1]
    h, stats = fused_upsample_conv(h, scale, shift, params["out_w"],
                                   hin=hin, win=win, s=sf, cin=cin, cout=co)
    hin, win = hin * sf, win * sf
    scale, shift = _bn_affine(stats, float(B * hin * win),
                              params["out_g"], params["out_b"])
    cin = co

    # final Conv2d(c_out, 1, 3, 1, 1) + bias + Sigmoid (previous BN folded in, s=1)
    y = fused_upsample_conv(h, scale, shift, params["final_w"],
                            hin=hin, win=win, s=1, cin=cin, cout=1,
                            relu_stats=False, bias=params["final_b"])       # (B, H*W, 1)
    return y.reshape(B, hin, win, 1).transpose(0, 3, 1, 2)                  # NCHW


if __name__ == "__main__":
    # Small configuration consistent with the module:
    #   layers = [8, 4, 8, 6], out_size = 8
    #   -> mlp: 8 -> 16, reshape to (B, 4, 2, 2)
    #   -> ConvUp(4, 8) [2x2 -> 4x4], ConvUp(8, 6, scale=2) [4x4 -> 8x8]
    #   -> Conv2d(6, 1, 3, 1, 1) + Sigmoid  => output (B, 1, 8, 8)
    layers = [8, 4, 8, 6]
    out_size = 8
    B = 2

    key = jax.random.PRNGKey(0)
    key, xkey = jax.random.split(key)
    x = jax.random.normal(xkey, (B, layers[0]), jnp.float32)
    params = build_params(key, layers)

    out = decoder_forward(x, params, layers, out_size)
    out = jax.block_until_ready(out)
    assert out.shape == (B, 1, out_size, out_size), out.shape
    assert bool(jnp.all(jnp.isfinite(out)))
    assert bool(jnp.all((out >= 0.0) & (out <= 1.0)))  # sigmoid range
    print("KERNEL_OK")
</pallas_src>

<mosaic_0001>
module attributes {stable_mosaic.version = 11 : i64} {
  func.func @_mlp_relu_bn_kernel(%arg0: i32, %arg1: memref<2x8xbf16, #tpu.memory_space<vmem>>, %arg2: memref<8x16xbf16, #tpu.memory_space<vmem>>, %arg3: memref<1x16xf32, #tpu.memory_space<vmem>>, %arg4: memref<1x16xf32, #tpu.memory_space<vmem>>, %arg5: memref<2x16xbf16, #tpu.memory_space<vmem>>) attributes {dimension_semantics = [#tpu.dimension_semantics<arbitrary>], iteration_bounds = array<i64: 1>, scalar_prefetch = 0 : i64, scratch_operands = 0 : i64, tpu.core_type = #tpu.core_type<tc>, window_params = [{pipeline_mode = #tpu.pipeline_mode<synchronous>, transform_indices = @transform_0, window_bounds = array<i64: 2, 8>}, {pipeline_mode = #tpu.pipeline_mode<synchronous>, transform_indices = @transform_1, window_bounds = array<i64: 8, 16>}, {pipeline_mode = #tpu.pipeline_mode<synchronous>, transform_indices = @transform_2, window_bounds = array<i64: 1, 16>}, {pipeline_mode = #tpu.pipeline_mode<synchronous>, transform_indices = @transform_3, window_bounds = array<i64: 1, 16>}, {pipeline_mode = #tpu.pipeline_mode<synchronous>, transform_indices = @transform_4, window_bounds = array<i64: 2, 16>}]} {
    %c0 = arith.constant 0 : index
    %c0_0 = arith.constant 0 : index
    %0 = vector.load %arg1[%c0, %c0_0] : memref<2x8xbf16, #tpu.memory_space<vmem>>, vector<2x8xbf16>
    %c0_1 = arith.constant 0 : index
    %c0_2 = arith.constant 0 : index
    %1 = vector.load %arg2[%c0_1, %c0_2] : memref<8x16xbf16, #tpu.memory_space<vmem>>, vector<8x16xbf16>
    %cst = arith.constant dense<0.000000e+00> : vector<2x16xf32>
    %2 = tpu.matmul %0, %1, %cst {dimension_numbers = #tpu.dot_dimension_numbers<[1], [0], [0], [1], [0, 0, 1, 1], [], []>} : vector<2x8xbf16>, vector<8x16xbf16>, vector<2x16xf32> -> vector<2x16xf32>
    %cst_3 = arith.constant 0.000000e+00 : f32
    %3 = vector.broadcast %cst_3 : f32 to vector<2x16xf32>
    %4 = arith.maximumf %2, %3 : vector<2x16xf32>
    %cst_4 = arith.constant dense<0.000000e+00> : vector<16xf32>
    %5 = vector.multi_reduction <add>, %4, %cst_4 [0] : vector<2x16xf32> to vector<16xf32>
    %6 = vector.shape_cast %5 : vector<16xf32> to vector<1x16xf32>
    %cst_5 = arith.constant 5.000000e-01 : f32
    %7 = vector.broadcast %cst_5 : f32 to vector<1x16xf32>
    %8 = arith.mulf %6, %7 : vector<1x16xf32>
    %9 = arith.mulf %4, %4 : vector<2x16xf32>
    %cst_6 = arith.constant dense<0.000000e+00> : vector<16xf32>
    %10 = vector.multi_reduction <add>, %9, %cst_6 [0] : vector<2x16xf32> to vector<16xf32>
    %11 = vector.shape_cast %10 : vector<16xf32> to vector<1x16xf32>
    %cst_7 = arith.constant 5.000000e-01 : f32
    %12 = vector.broadcast %cst_7 : f32 to vector<1x16xf32>
    %13 = arith.mulf %11, %12 : vector<1x16xf32>
    %14 = arith.mulf %8, %8 : vector<1x16xf32>
    %15 = arith.subf %13, %14 : vector<1x16xf32>
    %cst_8 = arith.constant 0.000000e+00 : f32
    %16 = vector.broadcast %cst_8 : f32 to vector<1x16xf32>
    %17 = arith.maximumf %15, %16 : vector<1x16xf32>
    %c0_9 = arith.constant 0 : index
    %c0_10 = arith.constant 0 : index
    %18 = vector.load %arg3[%c0_9, %c0_10] : memref<1x16xf32, #tpu.memory_space<vmem>>, vector<1x16xf32>
    %cst_11 = arith.constant 9.99999974E-6 : f32
    %19 = vector.broadcast %cst_11 : f32 to vector<1x16xf32>
    %20 = arith.addf %17, %19 : vector<1x16xf32>
    %21 = math.rsqrt %20 : vector<1x16xf32>
    %22 = arith.mulf %18, %21 : vector<1x16xf32>
    %c0_12 = arith.constant 0 : index
    %c0_13 = arith.constant 0 : index
    %23 = vector.load %arg4[%c0_12, %c0_13] : memref<1x16xf32, #tpu.memory_space<vmem>>, vector<1x16xf32>
    %24 = arith.mulf %8, %22 : vector<1x16xf32>
    %25 = arith.subf %23, %24 : vector<1x16xf32>
    %26 = vector.broadcast %22 : vector<1x16xf32> to vector<2x16xf32>
    %27 = arith.mulf %4, %26 : vector<2x16xf32>
    %28 = vector.broadcast %25 : vector<1x16xf32> to vector<2x16xf32>
    %29 = arith.addf %27, %28 : vector<2x16xf32>
    %30 = arith.truncf %29 : vector<2x16xf32> to vector<2x16xbf16>
    %c0_14 = arith.constant 0 : index
    %c0_15 = arith.constant 0 : index
    %31 = vector.load %arg5[%c0_14, %c0_15] : memref<2x16xbf16, #tpu.memory_space<vmem>>, vector<2x16xbf16>
    tpu.vector_store %arg5[%c0_14, %c0_15], %30 {strides = array<i32>} : memref<2x16xbf16, #tpu.memory_space<vmem>>, vector<2x16xbf16>,
    return
  }
  func.func @transform_0(%arg0: i32) -> (i32, i32) {
    %c0_i32 = arith.constant 0 : i32
    %c0_i32_0 = arith.constant 0 : i32
    %c0_i32_1 = arith.constant 0 : i32
    return %c0_i32, %c0_i32_0 : i32, i32
  }
  func.func @transform_1(%arg0: i32) -> (i32, i32) {
    %c0_i32 = arith.constant 0 : i32
    %c0_i32_0 = arith.constant 0 : i32
    %c0_i32_1 = arith.constant 0 : i32
    return %c0_i32, %c0_i32_0 : i32, i32
  }
  func.func @transform_2(%arg0: i32) -> (i32, i32) {
    %c0_i32 = arith.constant 0 : i32
    %c0_i32_0 = arith.constant 0 : i32
    %c0_i32_1 = arith.constant 0 : i32
    return %c0_i32, %c0_i32_0 : i32, i32
  }
  func.func @transform_3(%arg0: i32) -> (i32, i32) {
    %c0_i32 = arith.constant 0 : i32
    %c0_i32_0 = arith.constant 0 : i32
    %c0_i32_1 = arith.constant 0 : i32
    return %c0_i32, %c0_i32_0 : i32, i32
  }
  func.func @transform_4(%arg0: i32) -> (i32, i32) {
    %c0_i32 = arith.constant 0 : i32
    %c0_i32_0 = arith.constant 0 : i32
    %c0_i32_1 = arith.constant 0 : i32
    return %c0_i32, %c0_i32_0 : i32, i32
  }
}

</mosaic_0001>

<bundles_post_ra>
// kernel: tpu_custom_call.1
= control target key start
LH: loop header
LB: loop body
LE: loop exit
PB: predicated region body
PF: predicated region fallthrough
CT: control target
= control target key end

     0   :  { %9 = vsyncpa [#allocation3], 0  ;;  %s282_s0 = inlined_call_operand.hbm [shape: bf16[2,8], index: 0, kind: input, shape index: {}]   ;;  %s283_s1 = inlined_call_operand.hbm [shape: bf16[8,16], index: 1, kind: input, shape index: {}]   ;;  %s284_s2 = inlined_call_operand.vmem [shape: f32[1,16], index: 2, kind: input, shape index: {}]   ;;  %s285_s3 = inlined_call_operand.vmem [shape: f32[1,16], index: 3, kind: input, shape index: {}]   ;;  %s286_s4 = inlined_call_operand.hbm [shape: bf16[2,16], index: 4, kind: output, shape index: {}]  }
   0x1   :  { %10 = vsyncpa [#allocation6], 0 }
   0x2   :  { %11 = vsyncpa [#allocation4], 0  ;;  %s237_s15 = smov [#allocation2]   ;;  %s238_s17 = smov [#allocation5]  }
   0x3   :  { %s18_s16 = sshll.u32 %s237_s15, 4  ;;  %s28_s18 = sshll.u32 %s238_s17, 4  ;;  %s19_s16 = int_to_ptr.vmem [resolvable:$true] %s18_s16  ;;  %s29_s18 = int_to_ptr.vmem [resolvable:$true] %s28_s18 }
   0x4   :  { %s179_s19 = scalar_lea.vmem %s19_s16, 16  ;;  %s183_s20 = scalar_lea.vmem %s19_s16, 32 }
   0x5   :  { %p180_p0 = scmp.ne.s32.totalorder %s19_s16, %s179_s19  ;;  %p184_p1 = scmp.lt.s32.totalorder %s19_s16, %s19_s16 }
   0x6   :  { %p185_p2 = scmp.lt.s32.totalorder %s183_s20, %s179_s19 }
   0x8   :  { %p186_p3 = por %p185_p2, %p184_p1 }
   0xa   :  { %p187_p4 = pnand %p186_p3, %p180_p0 }
   0xc   :  { %190 = shalt.err (!%p187_p4)
}
   0xd   :  { %21 = dma.hbm_to_vmem [thread:$0]  %s282_s0, 16, %s19_s16, [#allocation3]  }
   0xe   :  { %s199_s23 = scalar_lea.vmem %s29_s18, 64  ;;  %p204_p6 = scmp.lt.s32.totalorder %s29_s18, %s29_s18 }
   0xf   :  { %p200_p5 = scmp.ne.s32.totalorder %s29_s18, %s199_s23  ;;  %p205_p7 = scmp.lt.s32.totalorder %s199_s23, %s199_s23 }
  0x11   :  { %p206_p8 = por %p205_p7, %p204_p6 }
  0x13   :  { %p207_p9 = pnand %p206_p8, %p200_p5 }
  0x15   :  { %210 = shalt.err (!%p207_p9)
}
  0x16   :  { %31 = dma.hbm_to_vmem [thread:$0]  %s283_s1, 64, %s29_s18, [#allocation6]  }
  0x17   :  { %231 = dma.done.wait [#allocation3], 16  }
  0x18   :  { %232 = vsyncadd [#allocation3], 4294967280 }
  0x19   :  { %233 = dma.done.wait [#allocation6], 64  }
  0x1a   :  { %234 = vsyncadd [#allocation6], 4294967232  ;;  %v239_v0 = vmov 0.0   ;;  %vm240_vm0 = vmmov 0   ;;  %vm49_vm1 = vcmask 1043456   ;;  %vm45_vm2 = vcmask 64512  }
  0x1b   :  { %158 = vmatprep.subr.bf16.mxu0 %v239_v0  ;;  %160 = vmatprep.mubr.msk.bf16.mxu0 %vm240_vm0, %v239_v0  ;;  %v44_v1 = vld [vmem:[#allocation5] sm:$0xf]  ;;  %v43_v3 = vld [vmem:[#allocation2] sm:$0x1]  ;;  %vm94_vm3 = vcmask 123904   ;;  %v123_v30 = vlaneseq  ;;  %s241_s28 = smov [#allocation7]  }
  0x1c   :  { %v51_v2 = vsel %vm49_vm1, %v44_v1, 0  ;;  %v115_v32 = vld [vmem:[%s284_s2] sm:$0x1]  ;;  %s145_s29 = sshll.u32 %s241_s28, 4  ;;  %vm137_vm4 = vcmask 122880   ;;  %s146_s29 = int_to_ptr.vmem [resolvable:$true] %s145_s29 }
  0x1d   :  { %159 = vmatpush3.bf16.msra.mxu0 %v51_v2  ;;  %v124_v31 = vshrl.u32 %v123_v30, 7  ;;  %v119_v36 = vld [vmem:[%s285_s3] sm:$0x1]  ;;  %s211_s2 = scalar_lea.vmem %s146_s29, 16  ;;  %s215_s30 = scalar_lea.vmem %s146_s29, 32 }
  0x1e   :  { %p212_p10 = scmp.ne.s32.totalorder %s146_s29, %s211_s2  ;;  %p216_p11 = scmp.lt.s32.totalorder %s146_s29, %s146_s29 }
  0x1f   :  { %v125_v33 = vsub.s32 0, %v124_v31  ;;  %p217_p12 = scmp.lt.s32.totalorder %s215_s30, %s211_s2 }
  0x20   :  { %161 = vmatmul.mubr.msk.bf16.vlgmr.msra.gmra.mxu0 %vm45_vm2, %v43_v3 }
  0x21   :  { %p218_p13 = por %p217_p12, %p216_p11 }
  0x23   :  { %p219_p0 = pnand %p218_p13, %p212_p10 }
  0xe0   :  { %v87_v4 = vpop.f32.mrf.mxu0 }
  0xe1   :  { %v93_v5 = vmax.f32 %v87_v4, 0.0 }
  0xe2   :  { %v162_v6 = vpop.f32.mrf.mxu0 }
  0xe3   :  { %v95_v7 = vsel %vm94_vm3, %v93_v5, 0.0  ;;  %v103_v8 = vmul.f32 %v93_v5, %v93_v5 }
  0xe4   :  { %v96_v9 = vrot.slane %v95_v7, 4  ;;  %v90_v10 = vpop.f32.mrf.mxu0 }
  0xe5   :  { %v104_v11 = vsel %vm94_vm3, %v103_v8, 0.0 }
  0xe6   :  { %v97_v12 = vadd.f32 %v96_v9, %v95_v7  ;;  %v105_v13 = vrot.slane %v104_v11, 4  ;;  %v163_v14 = vpop.f32.mrf.mxu0 }
  0xe8   :  { %v98_v15 = vrot.slane %v97_v12, 2  ;;  %v106_v16 = vadd.f32 %v105_v13, %v104_v11 }
  0xea   :  { %v99_v17 = vadd.f32 %v98_v15, %v97_v12  ;;  %v107_v18 = vrot.slane %v106_v16, 2 }
  0xec   :  { %v100_v19 = vrot.slane %v99_v17, 1  ;;  %v108_v20 = vadd.f32 %v107_v18, %v106_v16 }
  0xee   :  { %v101_v21 = vadd.f32 %v100_v19, %v99_v17  ;;  %v109_v22 = vrot.slane %v108_v20, 1 }
  0xf0   :  { %v102_v23 = vmul.f32 0.5, %v101_v21  ;;  %v110_v24 = vadd.f32 %v109_v22, %v108_v20 }
  0xf2   :  { %v111_v25 = vmul.f32 0.5, %v110_v24  ;;  %v112_v26 = vmul.f32 %v102_v23, %v102_v23 }
  0xf4   :  { %v113_v27 = vsub.f32 %v111_v25, %v112_v26 }
  0xf6   :  { %v114_v28 = vmax.f32 %v113_v27, 0.0 }
  0xf8   :  { %v116_v29 = vadd.f32 1e-05, %v114_v28 }
  0xfa   :  { %169 = vrsqrt.f32 %v116_v29 }
 0x107   :  { %v170_v34 = vpop.eup %169 }
 0x108   :  { %v118_v35 = vmul.f32 %v170_v34, %v115_v32 }
 0x10a   :  { %v120_v37 = vmul.f32 %v118_v35, %v102_v23  ;;  %v126_v38 = vrot.slane %v118_v35, %v125_v33 }
 0x10c   :  { %v121_v39 = vsub.f32 %v119_v36, %v120_v37  ;;  %v128_v40 = vmul.f32 %v126_v38, %v93_v5 }
 0x10e   :  { %v133_v41 = vrot.slane %v121_v39, %v125_v33 }
 0x110   :  { %v135_v42 = vadd.f32 %v133_v41, %v128_v40 }
 0x112   :  { %v136_v43 = vpack.c.bf16 %v135_v42, %v135_v42 }
 0x114   :  { %138 = vst.msk [vmem:[#allocation7] sm:$0x1] %vm137_vm4, %v136_v43 }
 0x115   :  { %222 = shalt.err (!%p219_p0)
}
 0x116   :  { %148 = dma.vmem_to_hbm [thread:$0]  %s146_s29, 16, %s286_s4, [#allocation4]  }
 0x117   :  { %235 = dma.done.wait [#allocation4], 16  }
 0x118   :  { %236 = vsyncadd [#allocation4], 4294967280 }
 0x119   :  { %152 = vsyncpa [#allocation3], 1 }
 0x11a   :  { %153 = vsyncpa [#allocation6], 1 }
 0x11b   :  { %154 = vsyncpa [#allocation4], 1 }

</bundles_post_ra>
